<compile_context>
chip_gen: v5e
topology: v5e:2x2
jax: 0.10.0
libtpu: 0.0.40
codegen_flags: <defaults>
</compile_context>

<pallas_src>
import jax
import jax.numpy as jnp
from jax.experimental import pallas as pl
from jax.experimental.pallas import tpu as pltpu


def _discriminator_kernel(obs_ref, act_ref, w1o_ref, w1a_ref, b1_ref,
                          w2_ref, b2_ref, w3_ref, b3_ref, out_ref):
    # Feature-major tiles: obs_ref (Dobs, TB), act_ref (Dact, TB); activations are (H, TB)
    # so the 128-lane axis carries the batch (full lane density for every VPU/EUP op).
    h1 = jnp.tanh(
        jnp.dot(w1o_ref[...], obs_ref[...], preferred_element_type=jnp.float32)
        + jnp.dot(w1a_ref[...], act_ref[...], preferred_element_type=jnp.float32)
        + b1_ref[...])                                                    # (H, TB)
    h2 = jnp.tanh(
        jnp.dot(w2_ref[...], h1, preferred_element_type=jnp.float32)
        + b2_ref[...])                                                    # (H, TB)
    # Layer 3 (out_features == 1): broadcast-multiply + sublane reduce instead of an
    # M=1 MXU matmul; b3 is a scalar read from SMEM.  Output is already lane-dense (1, TB).
    out_ref[...] = (jnp.sum(h2 * w3_ref[...], axis=0, keepdims=True)
                    + b3_ref[0, 0]).astype(out_ref.dtype)


def _cdiv(a, b):
    return -(-a // b)


def _round_up(x, m):
    return _cdiv(x, m) * m


def _pick_batch_tiling(B, block_b):
    """Lane-aligned batch tile and grid size.

    Big tiles amortize the ~0.35 us fixed per-grid-step cost.  When B is large enough we
    prefer (best effort) an even tile count >= 2 so the 'parallel' grid axis shards across
    both v7x TensorCores; v5e/v6e (1 TC) are unaffected.
    """
    B128 = _round_up(max(B, 1), 128)
    tb_cap = max(128, _round_up(block_b, 128))
    nb = _cdiv(B128, tb_cap)
    if B128 >= 256:
        if nb < 2:
            nb = 2
        elif nb % 2 == 1:
            nb += 1
    tb = _round_up(_cdiv(B128, nb), 128)
    nb = _cdiv(B128, tb)          # re-derive so the last tile always overlaps real rows
    return tb, nb


def transition_classifier_forward(obs, actions, params, *, block_b=4096):
    """obs: (B, Dobs) f32, actions: (B, Dact) f32 -> logits (B, 1) f32."""
    B, Dobs = obs.shape
    _, Dact = actions.shape
    w1 = params["w1"]                                   # (Dobs + Dact, H)
    H = w1.shape[1]

    # ---- fold RunningMeanStd normalization into the layer-1 weight/bias (exact) ----
    # obs_n @ W1_obs == obs @ (W1_obs / std) - (mean / std) @ W1_obs
    inv_std = 1.0 / params["rms_std"]                                    # (1, Dobs)
    w1o_t = (w1[:Dobs, :] * inv_std.reshape(Dobs, 1)).T                  # (H, Dobs)
    w1a_t = w1[Dobs:, :].T                                               # (H, Dact)
    b1_col = (params["b1"]
              - (params["rms_mean"] * inv_std) @ w1[:Dobs, :]).reshape(H, 1)
    w2_t = params["w2"].T                                                # (H, H)
    b2_col = params["b2"].reshape(H, 1)
    w3_col = params["w3"].reshape(H, 1)
    b3 = params["b3"].reshape(1, 1)                                      # scalar -> SMEM

    # ---- batch tiling: big lane-aligned tiles, 'parallel' grid axis, no input padding ----
    tb, nb = _pick_batch_tiling(B, block_b)
    b_pad = nb * tb

    obs_t = obs.T                                                        # (Dobs, B)
    act_t = actions.T                                                    # (Dact, B)

    const = lambda shape: pl.BlockSpec(shape, lambda i, _n=len(shape): (0,) * _n)

    out = pl.pallas_call(
        _discriminator_kernel,
        out_shape=jax.ShapeDtypeStruct((1, b_pad), jnp.float32),
        grid=(nb,),
        in_specs=[
            pl.BlockSpec((Dobs, tb), lambda i: (0, i)),  # obs, streamed per batch tile
            pl.BlockSpec((Dact, tb), lambda i: (0, i)),  # actions, streamed per batch tile
            const((H, Dobs)),                            # W1_obs (RMS-folded), VMEM-resident
            const((H, Dact)),                            # W1_act
            const((H, 1)),                               # b1 (folded), column vector
            const((H, H)),                               # W2^T
            const((H, 1)),                               # b2
            const((H, 1)),                               # W3 as a column vector
            pl.BlockSpec(memory_space=pltpu.SMEM),       # b3 scalar in SMEM
        ],
        out_specs=pl.BlockSpec((1, tb), lambda i: (0, i)),  # lane-dense logits slab
        compiler_params=pltpu.CompilerParams(
            dimension_semantics=("parallel",)),
    )(obs_t, act_t, w1o_t, w1a_t, b1_col, w2_t, b2_col, w3_col, b3)

    # Rows >= B in the padded slab are garbage from the ragged last tile; discard them.
    return out[0, :B][:, None]                                           # (B, 1)


def init_params(key, obs_dim, n_actions, hidden_size, epsilon=0.01):
    """nn.Linear-style init (uniform +/- 1/sqrt(fan_in)) and a fresh RunningMeanStd
    (count=eps, sum=0, sumsq=eps  =>  mean=0, std=1)."""
    ks = jax.random.split(key, 6)
    in_dim = obs_dim + n_actions

    def linear(kw, kb, fan_in, fan_out):
        bound = 1.0 / jnp.sqrt(jnp.float32(fan_in))
        w = jax.random.uniform(kw, (fan_in, fan_out), jnp.float32, -bound, bound)
        b = jax.random.uniform(kb, (1, fan_out), jnp.float32, -bound, bound)
        return w, b

    w1, b1 = linear(ks[0], ks[1], in_dim, hidden_size)
    w2, b2 = linear(ks[2], ks[3], hidden_size, hidden_size)
    w3, b3 = linear(ks[4], ks[5], hidden_size, 1)

    return {
        "w1": w1, "b1": b1,
        "w2": w2, "b2": b2,
        "w3": w3, "b3": b3.reshape(1, 1),
        "rms_mean": jnp.zeros((1, obs_dim), jnp.float32),
        "rms_std": jnp.ones((1, obs_dim), jnp.float32),
    }


def reference_forward(obs, actions, params):
    obs_n = (obs - params["rms_mean"]) / params["rms_std"]
    x = jnp.concatenate([obs_n, actions], axis=1)
    h1 = jnp.tanh(x @ params["w1"] + params["b1"])
    h2 = jnp.tanh(h1 @ params["w2"] + params["b2"])
    return h2 @ params["w3"] + params["b3"]


if __name__ == "__main__":
    B, OBS_DIM, N_ACTIONS, HIDDEN = 8, 16, 4, 32

    key = jax.random.PRNGKey(0)
    k_obs, k_act, k_param, k_mean, k_std = jax.random.split(key, 5)

    obs = jax.random.normal(k_obs, (B, OBS_DIM), jnp.float32)
    actions = jax.random.normal(k_act, (B, N_ACTIONS), jnp.float32)
    params = init_params(k_param, OBS_DIM, N_ACTIONS, HIDDEN)

    # Non-trivial RMS stats (as after several .update() calls) so the
    # normalization-fold path is actually exercised.
    params["rms_mean"] = 0.3 * jax.random.normal(k_mean, (1, OBS_DIM), jnp.float32)
    params["rms_std"] = 0.5 + jax.random.uniform(k_std, (1, OBS_DIM), jnp.float32)

    logits = transition_classifier_forward(obs, actions, params)
    logits = jax.block_until_ready(logits)

    ref = reference_forward(obs, actions, params)
    assert logits.shape == (B, 1), logits.shape
    err = jnp.max(jnp.abs(logits - ref))
    assert jnp.allclose(logits, ref, atol=1e-4, rtol=1e-4), f"mismatch vs reference: {err:.3e}"

    # TODO(synk): get_reward / train_discriminator (BCE losses, Bernoulli entropy, Adam step,
    # RunningMeanStd.update, discrete-action one-hot/error-recovery branches) are host-side
    # training / control-flow logic and are not part of this kernel.
    print("KERNEL_OK")
</pallas_src>

<mosaic_0001>
module attributes {stable_mosaic.version = 11 : i64} {
  func.func @_discriminator_kernel(%arg0: i32, %arg1: memref<16x128xf32, #tpu.memory_space<vmem>>, %arg2: memref<4x128xf32, #tpu.memory_space<vmem>>, %arg3: memref<32x16xf32, #tpu.memory_space<vmem>>, %arg4: memref<32x4xf32, #tpu.memory_space<vmem>>, %arg5: memref<32x1xf32, #tpu.memory_space<vmem>>, %arg6: memref<32x32xf32, #tpu.memory_space<vmem>>, %arg7: memref<32x1xf32, #tpu.memory_space<vmem>>, %arg8: memref<32x1xf32, #tpu.memory_space<vmem>>, %arg9: memref<1x1xf32, #tpu.memory_space<smem>>, %arg10: memref<1x128xf32, #tpu.memory_space<vmem>>) attributes {dimension_semantics = [#tpu.dimension_semantics<parallel>], iteration_bounds = array<i64: 1>, scalar_prefetch = 0 : i64, scratch_operands = 0 : i64, tpu.core_type = #tpu.core_type<tc>, window_params = [{transform_indices = @transform_0, window_bounds = array<i64: 16, 128>}, {transform_indices = @transform_1, window_bounds = array<i64: 4, 128>}, {pipeline_mode = #tpu.pipeline_mode<synchronous>, transform_indices = @transform_2, window_bounds = array<i64: 32, 16>}, {pipeline_mode = #tpu.pipeline_mode<synchronous>, transform_indices = @transform_3, window_bounds = array<i64: 32, 4>}, {pipeline_mode = #tpu.pipeline_mode<synchronous>, transform_indices = @transform_4, window_bounds = array<i64: 32, 1>}, {pipeline_mode = #tpu.pipeline_mode<synchronous>, transform_indices = @transform_5, window_bounds = array<i64: 32, 32>}, {pipeline_mode = #tpu.pipeline_mode<synchronous>, transform_indices = @transform_6, window_bounds = array<i64: 32, 1>}, {pipeline_mode = #tpu.pipeline_mode<synchronous>, transform_indices = @transform_7, window_bounds = array<i64: 32, 1>}, {transform_indices = @transform_8, window_bounds = array<i64: 1, 1>}, {transform_indices = @transform_9, window_bounds = array<i64: 1, 128>}]} {
    %c0 = arith.constant 0 : index
    %c0_0 = arith.constant 0 : index
    %0 = vector.load %arg3[%c0, %c0_0] : memref<32x16xf32, #tpu.memory_space<vmem>>, vector<32x16xf32>
    %c0_1 = arith.constant 0 : index
    %c0_2 = arith.constant 0 : index
    %1 = vector.load %arg1[%c0_1, %c0_2] : memref<16x128xf32, #tpu.memory_space<vmem>>, vector<16x128xf32>
    %cst = arith.constant dense<0.000000e+00> : vector<32x128xf32>
    %2 = tpu.matmul %0, %1, %cst {dimension_numbers = #tpu.dot_dimension_numbers<[1], [0], [0], [1], [0, 0, 1, 1], [], []>} : vector<32x16xf32>, vector<16x128xf32>, vector<32x128xf32> -> vector<32x128xf32>
    %c0_3 = arith.constant 0 : index
    %c0_4 = arith.constant 0 : index
    %3 = vector.load %arg4[%c0_3, %c0_4] : memref<32x4xf32, #tpu.memory_space<vmem>>, vector<32x4xf32>
    %c0_5 = arith.constant 0 : index
    %c0_6 = arith.constant 0 : index
    %4 = vector.load %arg2[%c0_5, %c0_6] : memref<4x128xf32, #tpu.memory_space<vmem>>, vector<4x128xf32>
    %cst_7 = arith.constant dense<0.000000e+00> : vector<32x128xf32>
    %5 = tpu.matmul %3, %4, %cst_7 {dimension_numbers = #tpu.dot_dimension_numbers<[1], [0], [0], [1], [0, 0, 1, 1], [], []>} : vector<32x4xf32>, vector<4x128xf32>, vector<32x128xf32> -> vector<32x128xf32>
    %6 = arith.addf %2, %5 : vector<32x128xf32>
    %c0_8 = arith.constant 0 : index
    %c0_9 = arith.constant 0 : index
    %7 = vector.load %arg5[%c0_8, %c0_9] : memref<32x1xf32, #tpu.memory_space<vmem>>, vector<32x1xf32>
    %8 = vector.broadcast %7 : vector<32x1xf32> to vector<32x128xf32>
    %9 = arith.addf %6, %8 : vector<32x128xf32>
    %10 = math.tanh %9 : vector<32x128xf32>
    %c0_10 = arith.constant 0 : index
    %c0_11 = arith.constant 0 : index
    %11 = vector.load %arg6[%c0_10, %c0_11] : memref<32x32xf32, #tpu.memory_space<vmem>>, vector<32x32xf32>
    %cst_12 = arith.constant dense<0.000000e+00> : vector<32x128xf32>
    %12 = tpu.matmul %11, %10, %cst_12 {dimension_numbers = #tpu.dot_dimension_numbers<[1], [0], [0], [1], [0, 0, 1, 1], [], []>} : vector<32x32xf32>, vector<32x128xf32>, vector<32x128xf32> -> vector<32x128xf32>
    %c0_13 = arith.constant 0 : index
    %c0_14 = arith.constant 0 : index
    %13 = vector.load %arg7[%c0_13, %c0_14] : memref<32x1xf32, #tpu.memory_space<vmem>>, vector<32x1xf32>
    %14 = vector.broadcast %13 : vector<32x1xf32> to vector<32x128xf32>
    %15 = arith.addf %12, %14 : vector<32x128xf32>
    %16 = math.tanh %15 : vector<32x128xf32>
    %c0_15 = arith.constant 0 : index
    %c0_16 = arith.constant 0 : index
    %17 = vector.load %arg8[%c0_15, %c0_16] : memref<32x1xf32, #tpu.memory_space<vmem>>, vector<32x1xf32>
    %18 = vector.broadcast %17 : vector<32x1xf32> to vector<32x128xf32>
    %19 = arith.mulf %16, %18 : vector<32x128xf32>
    %cst_17 = arith.constant dense<0.000000e+00> : vector<128xf32>
    %20 = vector.multi_reduction <add>, %19, %cst_17 [0] : vector<32x128xf32> to vector<128xf32>
    %21 = vector.shape_cast %20 : vector<128xf32> to vector<1x128xf32>
    %c0_18 = arith.constant 0 : index
    %c0_19 = arith.constant 0 : index
    %22 = memref.load %arg9[%c0_18, %c0_19] : memref<1x1xf32, #tpu.memory_space<smem>>
    %23 = vector.broadcast %22 : f32 to vector<1x128xf32>
    %24 = arith.addf %21, %23 : vector<1x128xf32>
    %c0_20 = arith.constant 0 : index
    %c0_21 = arith.constant 0 : index
    %25 = vector.load %arg10[%c0_20, %c0_21] : memref<1x128xf32, #tpu.memory_space<vmem>>, vector<1x128xf32>
    tpu.vector_store %arg10[%c0_20, %c0_21], %24 {strides = array<i32>} : memref<1x128xf32, #tpu.memory_space<vmem>>, vector<1x128xf32>,
    return
  }
  func.func @transform_0(%arg0: i32) -> (i32, i32) {
    %c0_i32 = arith.constant 0 : i32
    %c0_i32_0 = arith.constant 0 : i32
    return %c0_i32, %arg0 : i32, i32
  }
  func.func @transform_1(%arg0: i32) -> (i32, i32) {
    %c0_i32 = arith.constant 0 : i32
    %c0_i32_0 = arith.constant 0 : i32
    return %c0_i32, %arg0 : i32, i32
  }
  func.func @transform_2(%arg0: i32) -> (i32, i32) {
    %c0_i32 = arith.constant 0 : i32
    %c0_i32_0 = arith.constant 0 : i32
    %c0_i32_1 = arith.constant 0 : i32
    return %c0_i32, %c0_i32_0 : i32, i32
  }
  func.func @transform_3(%arg0: i32) -> (i32, i32) {
    %c0_i32 = arith.constant 0 : i32
    %c0_i32_0 = arith.constant 0 : i32
    %c0_i32_1 = arith.constant 0 : i32
    return %c0_i32, %c0_i32_0 : i32, i32
  }
  func.func @transform_4(%arg0: i32) -> (i32, i32) {
    %c0_i32 = arith.constant 0 : i32
    %c0_i32_0 = arith.constant 0 : i32
    %c0_i32_1 = arith.constant 0 : i32
    return %c0_i32, %c0_i32_0 : i32, i32
  }
  func.func @transform_5(%arg0: i32) -> (i32, i32) {
    %c0_i32 = arith.constant 0 : i32
    %c0_i32_0 = arith.constant 0 : i32
    %c0_i32_1 = arith.constant 0 : i32
    return %c0_i32, %c0_i32_0 : i32, i32
  }
  func.func @transform_6(%arg0: i32) -> (i32, i32) {
    %c0_i32 = arith.constant 0 : i32
    %c0_i32_0 = arith.constant 0 : i32
    %c0_i32_1 = arith.constant 0 : i32
    return %c0_i32, %c0_i32_0 : i32, i32
  }
  func.func @transform_7(%arg0: i32) -> (i32, i32) {
    %c0_i32 = arith.constant 0 : i32
    %c0_i32_0 = arith.constant 0 : i32
    %c0_i32_1 = arith.constant 0 : i32
    return %c0_i32, %c0_i32_0 : i32, i32
  }
  func.func @transform_8(%arg0: i32) -> (i32, i32) {
    %c0_i32 = arith.constant 0 : i32
    %c0_i32_0 = arith.constant 0 : i32
    %c0_i32_1 = arith.constant 0 : i32
    return %c0_i32, %c0_i32_0 : i32, i32
  }
  func.func @transform_9(%arg0: i32) -> (i32, i32) {
    %c0_i32 = arith.constant 0 : i32
    %c0_i32_0 = arith.constant 0 : i32
    return %c0_i32, %arg0 : i32, i32
  }
}

</mosaic_0001>

<bundles_post_ra>
// kernel: tpu_custom_call.1
= control target key start
LH: loop header
LB: loop body
LE: loop exit
PB: predicated region body
PF: predicated region fallthrough
CT: control target
= control target key end

     0   :  { %vm58_vm0 = vcmask 1043456   ;;  %vm45_vm1 = vcmask 31744   ;;  %vm91_vm2 = vcmask 130048   ;;  %v362_v6 = vmov 0   ;;  %s509_s0 = inlined_call_operand.vmem [shape: f32[16,8], index: 0, kind: input, shape index: {}]   ;;  %s510_s1 = inlined_call_operand.vmem [shape: f32[4,8], index: 1, kind: input, shape index: {}]   ;;  %s511_s2 = inlined_call_operand.vmem [shape: f32[32,16], index: 2, kind: input, shape index: {}]   ;;  %s512_s3 = inlined_call_operand.vmem [shape: f32[32,4], index: 3, kind: input, shape index: {}]   ;;  %s513_s4 = inlined_call_operand.vmem [shape: f32[32,1], index: 4, kind: input, shape index: {}]   ;;  %s514_s5 = inlined_call_operand.vmem [shape: f32[32,32], index: 5, kind: input, shape index: {}]   ;;  %s515_s6 = inlined_call_operand.vmem [shape: f32[32,1], index: 6, kind: input, shape index: {}]   ;;  %s516_s7 = inlined_call_operand.vmem [shape: f32[32,1], index: 7, kind: input, shape index: {}]   ;;  %s517_s8 = inlined_call_operand.<no memory space> [shape: f32[1,1], index: 8, kind: input, shape index: {}]   ;;  %s518_s9 = inlined_call_operand.hbm [shape: f32[1,128], index: 9, kind: output, shape index: {}]  }
   0x1   :  { %v44_v0 = vld [vmem:[%s510_s1] sm:$0xf]  ;;  %v39_v1 = vld [vmem:[%s509_s0 + $0x8] sm:$0xff]  ;;  %v136_v5 = vld [vmem:[%s513_s4 + $0x18] sm:$0xff]  ;;  %318 = vset.pattern.permute.xlu1 %v362_v6  ;;  %317 = vset.pattern.permute.xlu0 %v362_v6 }
   0x2   :  { %v40_v2 = vld [vmem:[%s512_s3] sm:$0xff]  ;;  %296 = vmatpush.msk.msra.mxu0 %vm58_vm0, %v44_v0  ;;  %118 = vmatpush.msra.mxu1 %v39_v1  ;;  %v134_v7 = vld [vmem:[%s513_s4 + $0x8] sm:$0xff]  ;;  %v37_v8 = vld [vmem:[%s511_s2 + $0x18] sm:$0xff] }
   0x3   :  { %v38_v3 = vld [vmem:[%s509_s0] sm:$0xff]  ;;  %297 = vmatmul.msk.f32.vlgmr.msra.gmra.mxu0 %vm45_vm1, %v40_v2  ;;  %154 = vperm.xlu0 %317, %v136_v5  }
   0x4   :  { %v34_v4 = vld [vmem:[%s511_s2] sm:$0xff]  ;;  %119 = vmatpush.msra.mxu1 %v38_v3  ;;  %144 = vperm.xlu1 %318, %v134_v7  }
   0x5   :  { %301 = vmatmul.msk.f32.vlgmr.msra.gmra.mxu1 %vm91_vm2, %v34_v4  ;;  %309 = vmatpush.msra.mxu2 %v39_v1 }
   0x6   :  { %319 = vset.pattern.permute.xlu2 %v362_v6 }
   0x7   :  { %15 = vsyncpa [#allocation4], 0  ;;  %v41_v9 = vld [vmem:[%s512_s3 + $0x8] sm:$0xff]  ;;  %310 = vmatpush.msra.mxu2 %v38_v3  ;;  %v135_v11 = vld [vmem:[%s513_s4 + $0x10] sm:$0xff]  ;;  %vm193_vm3 = vcmask 261120   ;;  %s363_s13 = smov [#allocation3]  }
   0x8   :  { %304 = vmatmul.msk.f32.vlgmr.msra.gmra.mxu2 %vm91_vm2, %v37_v8  ;;  %v35_v10 = vld [vmem:[%s511_s2 + $0x8] sm:$0xff]  ;;  %v133_v12 = vld [vmem:[%s513_s4] sm:$0xff]  ;;  %v42_v13 = vld [vmem:[%s512_s3 + $0x10] sm:$0xff]  ;;  %s285_s14 = sshll.u32 %s363_s13, 4  ;;  %s287_s4 = sshll.u32 %s518_s9, 4  ;;  %s286_s14 = int_to_ptr.vmem [resolvable:$true] %s285_s14  ;;  %s288_s4 = int_to_ptr.hbm [resolvable:$true] %s287_s4 }
   0x9   :  { %v36_v14 = vld [vmem:[%s511_s2 + $0x10] sm:$0xff]  ;;  %v172_v16 = vld [vmem:[%s515_s6 + $0x18] sm:$0xff]  ;;  %v240_v18 = vld [vmem:[%s516_s7 + $0x8] sm:$0xff] }
   0xa   :  { %v171_v15 = vld [vmem:[%s515_s6 + $0x10] sm:$0xff]  ;;  %v43_v17 = vld [vmem:[%s512_s3 + $0x18] sm:$0xff]  ;;  %v169_v37 = vld [vmem:[%s515_s6] sm:$0xff] }
   0xb   :  { %298 = vmatmul.msk.f32.gmra.mxu0 %vm45_vm1, %v41_v9  ;;  %149 = vperm.xlu0 %317, %v135_v11   ;;  %v241_v19 = vld [vmem:[%s516_s7 + $0x10] sm:$0xff]  ;;  %v170_v41 = vld [vmem:[%s515_s6 + $0x8] sm:$0xff]  ;;  %v165_v45 = vld [vmem:[%s514_s5] sm:$0xff] }
   0xc   :  { %139 = vperm.xlu1 %318, %v133_v12   ;;  %175 = vperm.xlu2 %319, %v169_v37   ;;  %v166_v46 = vld [vmem:[%s514_s5 + $0x8] sm:$0xff]  ;;  %v239_v48 = vld [vmem:[%s516_s7] sm:$0xff]  ;;  %v167_v49 = vld [vmem:[%s514_s5 + $0x10] sm:$0xff] }
   0xd   :  { %302 = vmatmul.msk.f32.gmra.mxu1 %vm91_vm2, %v35_v10  ;;  %v242_v50 = vld [vmem:[%s516_s7 + $0x18] sm:$0xff] }
   0xe   :  { %v168_v51 = vld [vmem:[%s514_s5 + $0x18] sm:$0xff] }
  0x13   :  { %299 = vmatmul.msk.f32.gmra.mxu0 %vm45_vm1, %v42_v13  ;;  %185 = vperm.xlu0 %317, %v171_v15  }
  0x14   :  { %190 = vperm.xlu1 %318, %v172_v16   ;;  %180 = vperm.xlu2 %319, %v170_v41  }
  0x15   :  { %303 = vmatmul.msk.f32.gmra.mxu1 %vm91_vm2, %v36_v14 }
  0x1b   :  { %300 = vmatmul.msk.f32.gmra.mxu0 %vm45_vm1, %v43_v17  ;;  %250 = vperm.xlu0 %317, %v240_v18  }
  0x1c   :  { %255 = vperm.xlu1 %318, %v241_v19   ;;  %245 = vperm.xlu2 %319, %v239_v48  }
  0x24   :  { %260 = vperm.xlu2 %319, %v242_v50  }
  0x66   :  { %v176_v52 = vpop.permute.xlu2 %175 }
  0x6e   :  { %v181_v55 = vpop.permute.xlu2 %180 }
  0x75   :  { %v155_v24 = vpop.permute.xlu0 %154 }
  0x76   :  { %v145_v26 = vpop.permute.xlu1 %144  ;;  %v246_v62 = vpop.permute.xlu2 %245 }
  0x7d   :  { %v150_v33 = vpop.permute.xlu0 %149 }
  0x7e   :  { %v140_v38 = vpop.permute.xlu1 %139  ;;  %v261_v11 = vpop.permute.xlu2 %260 }
  0x80   :  { %v79_v20 = vpop.f32.mrf.mxu0 }
  0x82   :  { %v121_v21 = vpop.f32.mrf.mxu1 }
  0x83   :  { %v122_v34 = vadd.f32 %v121_v21, %v79_v20  ;;  %v277_v20 = vstv %s517_s8 }
  0x85   :  { %v157_v40 = vadd.f32 %v140_v38, %v122_v34  ;;  %v186_v58 = vpop.permute.xlu0 %185 }
  0x86   :  { %v191_v61 = vpop.permute.xlu1 %190 }
  0x88   :  { %v82_v22 = vpop.f32.mrf.mxu0 }
  0x8a   :  { %v124_v23 = vpop.f32.mrf.mxu1 }
  0x8b   :  { %v130_v28 = vpop.f32.mrf.mxu2  ;;  %v125_v31 = vadd.f32 %v124_v23, %v82_v22 }
  0x8d   :  { %v158_v39 = vadd.f32 %v145_v26, %v125_v31  ;;  %v251_v4 = vpop.permute.xlu0 %250 }
  0x8e   :  { %v256_v7 = vpop.permute.xlu1 %255 }
  0x90   :  { %v85_v25 = vpop.f32.mrf.mxu0 }
  0x92   :  { %v127_v27 = vpop.f32.mrf.mxu1 }
  0x93   :  { %v128_v29 = vadd.f32 %v127_v27, %v85_v25 }
  0x95   :  { %v159_v35 = vadd.f32 %v150_v33, %v128_v29 }
  0x98   :  { %v88_v30 = vpop.f32.mrf.mxu0 }
  0x99   :  { %v131_v32 = vadd.f32 %v130_v28, %v88_v30 }
  0x9b   :  { %v160_v36 = vadd.f32 %v155_v24, %v131_v32 }
  0x9d   :  { %320 = vtanh.f32 %v160_v36 }
  0x9e   :  { %322 = vtanh.f32 %v159_v35 }
  0x9f   :  { %324 = vtanh.f32 %v158_v39 }
  0xa0   :  { %326 = vtanh.f32 %v157_v40 }
  0xa3   :  { %v321_v42 = vpop.eup %320 }
  0xa4   :  { %218 = vmatpush.msrb.mxu2 %v321_v42  ;;  %311 = vmatpush.msra.mxu3 %v321_v42  ;;  %v323_v43 = vpop.eup %322 }
  0xa5   :  { %v325_v44 = vpop.eup %324 }
  0xa6   :  { %219 = vmatpush.msrb.mxu2 %v323_v43  ;;  %312 = vmatpush.msra.mxu3 %v323_v43  ;;  %v327_v47 = vpop.eup %326 }
  0xa8   :  { %220 = vmatpush.msrb.mxu2 %v325_v44  ;;  %313 = vmatpush.msra.mxu3 %v325_v44 }
  0xaa   :  { %221 = vmatpush.msrb.mxu2 %v327_v47  ;;  %314 = vmatpush.msra.mxu3 %v327_v47 }
  0xab   :  { %305 = vmatmul.msk.f32.vlgmr.msrb.gmra.mxu2 %vm193_vm3, %v165_v45  ;;  %306 = vmatmul.msk.f32.vlgmr.msra.gmra.mxu3 %vm193_vm3, %v166_v46 }
  0xb3   :  { %307 = vmatmul.msk.f32.gmra.mxu3 %vm193_vm3, %v167_v49 }
  0xbb   :  { %308 = vmatmul.msk.f32.gmra.mxu3 %vm193_vm3, %v168_v51 }
 0x12e   :  { %v226_v53 = vpop.f32.mrf.mxu3  ;;  %v223_v54 = vpop.f32.mrf.mxu2 }
 0x12f   :  { %v224_v56 = vadd.f32 %v223_v54, %v176_v52  ;;  %v227_v57 = vadd.f32 %v226_v53, %v181_v55 }
 0x131   :  { %328 = vtanh.f32 %v224_v56 }
 0x132   :  { %330 = vtanh.f32 %v227_v57 }
 0x136   :  { %v229_v59 = vpop.f32.mrf.mxu3 }
 0x137   :  { %v230_v60 = vadd.f32 %v229_v59, %v186_v58  ;;  %v329_v63 = vpop.eup %328 }
 0x138   :  { %v331_v1 = vpop.eup %330  ;;  %v263_v5 = vmul.f32 %v329_v63, %v246_v62 }
 0x139   :  { %332 = vtanh.f32 %v230_v60  ;;  %v264_v6 = vmul.f32 %v331_v1, %v251_v4 }
 0x13b   :  { %v267_v9 = vadd.f32 %v264_v6, %v263_v5 }
 0x13e   :  { %v232_v0 = vpop.f32.mrf.mxu3 }
 0x13f   :  { %v233_v2 = vadd.f32 %v232_v0, %v191_v61  ;;  %v333_v3 = vpop.eup %332 }
 0x140   :  { %v265_v8 = vmul.f32 %v333_v3, %v256_v7 }
 0x141   :  { %334 = vtanh.f32 %v233_v2 }
 0x142   :  { %v268_v12 = vadd.f32 %v267_v9, %v265_v8 }
 0x147   :  { %v335_v10 = vpop.eup %334 }
 0x148   :  { %v266_v13 = vmul.f32 %v335_v10, %v261_v11 }
 0x14a   :  { %v269_v14 = vadd.f32 %v268_v12, %v266_v13 }
 0x14c   :  { %v270_v15 = vrot.slane %v269_v14, 4 }
 0x14e   :  { %v271_v16 = vadd.f32 %v270_v15, %v269_v14 }
 0x150   :  { %v272_v17 = vrot.slane %v271_v16, 2 }
 0x152   :  { %v273_v18 = vadd.f32 %v272_v17, %v271_v16 }
 0x154   :  { %v274_v19 = vrot.slane %v273_v18, 1 }
 0x156   :  { %v275_v21 = vadd.f32 %v274_v19, %v273_v18 }
 0x158   :  { %v278_v22 = vadd.f32 %v277_v20, %v275_v21 }
 0x15a   :  { %279 = vst [vmem:[#allocation3] sm:$0x1] %v278_v22 }
 0x15b   :  { %290 = dma.vmem_to_hbm [thread:$0]  %s286_s14, 16, %s288_s4, [#allocation4]  }
 0x15c   :  { %360 = dma.done.wait [#allocation4], 16  }
 0x15d   :  { %361 = vsyncadd [#allocation4], 4294967280 }
 0x15e   :  { %295 = vsyncpa [#allocation4], 1 }

</bundles_post_ra>
